<compile_context>
chip_gen: v7x
topology: tpu7x:2x2x1
jax: 0.10.0
libtpu: 0.0.40
codegen_flags: <defaults>
</compile_context>

<pallas_src>
import jax
import jax.numpy as jnp
from jax.experimental import pallas as pl
from jax.experimental.pallas import tpu as pltpu


def _round_up(x, m):
    return (x + m - 1) // m * m


def _vmem_limit_bytes(foot_bytes):
    """Generation-aware VMEM budget with headroom for Mosaic internal scratch."""
    try:
        cap = int(pltpu.get_tpu_info().vmem_capacity_bytes)
    except Exception:
        cap = 64 * 1024 * 1024  # conservative default (v7x per-core VMEM)
    return int(min(0.75 * cap, max(2 * foot_bytes, 32 * 1024 * 1024)))


def _mlp_kernel(x_ref, w1_ref, b1_ref, w2_ref, b2_ref, o_ref):
    # Cast activations to bf16 in-VMEM (cheaper than a wrapper-side cast round-trip to HBM).
    x = x_ref[...].astype(jnp.bfloat16)
    # linear1: [TB, D](bf16) @ [D, Hp](bf16) -> f32 accumulation on the MXU.
    h = jnp.dot(x, w1_ref[...], preferred_element_type=jnp.float32)
    # bias + ReLU epilogue in f32 (VPU slots, hidden under the MXU).
    h = jnp.maximum(h + b1_ref[...], 0.0)
    # dropout: eval-mode identity (matches module.eval()).
    # linear2: [TB, Hp](bf16) @ [Hp, O](bf16) -> f32 accumulation.
    y = jnp.dot(h.astype(jnp.bfloat16), w2_ref[...], preferred_element_type=jnp.float32)
    o_ref[...] = (y + b2_ref[...]).astype(o_ref.dtype)


def prepare_params(w1, b1, w2, b2):
    """One-time (amortized) weight prep: pad hidden dim to a lane multiple and cast to bf16.

    H-padding is exact: padded b1 entries are 0 -> ReLU(0)=0, and the matching W2 rows are 0,
    so they contribute nothing to the output.
    """
    d_in, h = w1.shape
    o = w2.shape[1]
    hp = _round_up(h, 128)
    w1p = jnp.pad(w1.astype(jnp.bfloat16), ((0, 0), (0, hp - h)))
    b1p = jnp.pad(b1.astype(jnp.float32), (0, hp - h)).reshape(1, hp)
    w2p = jnp.pad(w2.astype(jnp.bfloat16), ((0, hp - h), (0, 0)))
    b2p = b2.astype(jnp.float32).reshape(1, o)
    return {"w1": w1p, "b1": b1p, "w2": w2p, "b2": b2p,
            "d_in": d_in, "hidden_p": hp, "out": o}


def lazy_projection_mlp(x, params, *, tb=512, out_dtype=jnp.float32):
    """Fused MLP forward.  x: [..., D_in] -> [..., O]."""
    orig_shape = x.shape
    D_in = params["d_in"]
    Hp = params["hidden_p"]
    O = params["out"]
    assert orig_shape[-1] == D_in, (orig_shape, D_in)

    x2 = x.reshape(-1, D_in)
    B = x2.shape[0]

    # Batch tile: multiple of 16 (bf16 sublane packing), large default to fill the MXU M dim.
    TB = _round_up(min(tb, B), 16)
    # Keep >=2 grid steps when the batch allows so both v7x TensorCores get work.
    if pl.cdiv(B, TB) < 2 and B > 16:
        TB = _round_up(pl.cdiv(B, 2), 16)
    grid = (pl.cdiv(B, TB),)   # partial last block instead of batch padding

    x_bytes = x2.dtype.itemsize
    o_bytes = jnp.dtype(out_dtype).itemsize
    foot = (2 * TB * D_in * x_bytes          # x tile (double-buffered)
            + 2 * TB * O * o_bytes           # out tile (double-buffered)
            + D_in * Hp * 2 + Hp * O * 2     # weights (bf16, single-buffered)
            + Hp * 4 + O * 4                 # biases (f32)
            + TB * Hp * 4 + TB * Hp * 2      # f32 intermediate h + bf16 recast
            + TB * D_in * 2)                 # bf16 cast of x tile
    vmem_limit = _vmem_limit_bytes(foot)

    cost = pl.CostEstimate(
        flops=2 * B * (D_in * Hp + Hp * O),
        transcendentals=0,
        bytes_accessed=(B * D_in * x_bytes
                        + D_in * Hp * 2 + Hp * O * 2 + Hp * 4 + O * 4
                        + B * O * o_bytes),
    )

    def build(single_buffer_weights):
        resident_kw = {"pipeline_mode": pl.Buffered(1)} if single_buffer_weights else {}
        return pl.pallas_call(
            _mlp_kernel,
            out_shape=jax.ShapeDtypeStruct((B, O), out_dtype),
            grid_spec=pltpu.PrefetchScalarGridSpec(
                num_scalar_prefetch=0,
                grid=grid,
                in_specs=[
                    pl.BlockSpec((TB, D_in), lambda i: (i, 0)),                  # batch-tiled x
                    pl.BlockSpec((D_in, Hp), lambda i: (0, 0), **resident_kw),   # W1 resident
                    pl.BlockSpec((1, Hp), lambda i: (0, 0), **resident_kw),      # b1 resident
                    pl.BlockSpec((Hp, O), lambda i: (0, 0), **resident_kw),      # W2 resident
                    pl.BlockSpec((1, O), lambda i: (0, 0), **resident_kw),       # b2 resident
                ],
                out_specs=pl.BlockSpec((TB, O), lambda i: (i, 0)),
            ),
            compiler_params=pltpu.CompilerParams(
                dimension_semantics=("parallel",),
                vmem_limit_bytes=vmem_limit,
            ),
            cost_estimate=cost,
        )

    args = (x2, params["w1"], params["b1"], params["w2"], params["b2"])
    try:
        out = build(True)(*args)
    except Exception:
        # Fallback for jax/Mosaic builds without per-operand pipeline_mode support:
        # default double-buffered resident weights (correct, slightly more VMEM).
        out = build(False)(*args)

    return out.reshape(orig_shape[:-1] + (O,))


def init_params(key, in_dim, hidden_dim, out_dim, dtype=jnp.float32):
    """Deterministic parameter init (Kaiming-uniform-ish, like torch Linear defaults)."""
    k1, k2, k3, k4 = jax.random.split(key, 4)
    bound1 = 1.0 / jnp.sqrt(in_dim)
    bound2 = 1.0 / jnp.sqrt(hidden_dim)
    w1 = jax.random.uniform(k1, (in_dim, hidden_dim), dtype, -bound1, bound1)
    b1 = jax.random.uniform(k2, (hidden_dim,), dtype, -bound1, bound1)
    w2 = jax.random.uniform(k3, (hidden_dim, out_dim), dtype, -bound2, bound2)
    b2 = jax.random.uniform(k4, (out_dim,), dtype, -bound2, bound2)
    return w1, b1, w2, b2


if __name__ == "__main__":
    key = jax.random.PRNGKey(0)
    kx, kp = jax.random.split(key)

    # Small, non-128-aligned shapes exercising: leading-dim flatten, partial last batch block,
    # hidden-dim padding (64 -> 128), and masked narrow-O stores.
    BATCH, SEQ, D_IN, HIDDEN, OUT = 4, 12, 48, 64, 24
    x = jax.random.normal(kx, (BATCH, SEQ, D_IN), jnp.float32)
    w1, b1, w2, b2 = init_params(kp, D_IN, HIDDEN, OUT)

    params = prepare_params(w1, b1, w2, b2)   # one-time pad + bf16 cast (amortized)

    y = lazy_projection_mlp(x, params, tb=512)
    y = jax.block_until_ready(y)
    assert y.shape == (BATCH, SEQ, OUT)

    # Reference with matching numerics (bf16 matmul operands, f32 accumulation).
    x2 = x.reshape(-1, D_IN)
    xb, w1b, w2b = (a.astype(jnp.bfloat16) for a in (x2, w1, w2))
    h_ref = jnp.maximum(jnp.dot(xb, w1b, preferred_element_type=jnp.float32) + b1, 0.0)
    y_ref = jnp.dot(h_ref.astype(jnp.bfloat16), w2b, preferred_element_type=jnp.float32) + b2
    y2 = y.reshape(-1, OUT)
    assert jnp.allclose(y2, y_ref, atol=2e-3, rtol=2e-3), float(jnp.max(jnp.abs(y2 - y_ref)))

    # Looser sanity check against full-f32 math (bf16 rounding covered by the tolerance).
    y_f32 = jnp.maximum(x2 @ w1 + b1, 0.0) @ w2 + b2
    assert jnp.allclose(y2, y_f32, atol=5e-2, rtol=5e-2)

    print("KERNEL_OK")
</pallas_src>

<mosaic_0001>
module attributes {stable_mosaic.version = 11 : i64} {
  func.func @_mlp_kernel(%arg0: i32, %arg1: memref<32x48xf32, #tpu.memory_space<vmem>>, %arg2: memref<48x128xbf16, #tpu.memory_space<vmem>>, %arg3: memref<1x128xf32, #tpu.memory_space<vmem>>, %arg4: memref<128x24xbf16, #tpu.memory_space<vmem>>, %arg5: memref<1x24xf32, #tpu.memory_space<vmem>>, %arg6: memref<32x24xf32, #tpu.memory_space<vmem>>) attributes {dimension_semantics = [#tpu.dimension_semantics<parallel>], iteration_bounds = array<i64: 2>, scalar_prefetch = 0 : i64, scratch_operands = 0 : i64, tpu.core_type = #tpu.core_type<tc>, window_params = [{transform_indices = @transform_0, window_bounds = array<i64: 32, 48>}, {pipeline_mode = #tpu.pipeline_mode<synchronous>, transform_indices = @transform_1, window_bounds = array<i64: 48, 128>}, {pipeline_mode = #tpu.pipeline_mode<synchronous>, transform_indices = @transform_2, window_bounds = array<i64: 1, 128>}, {pipeline_mode = #tpu.pipeline_mode<synchronous>, transform_indices = @transform_3, window_bounds = array<i64: 128, 24>}, {pipeline_mode = #tpu.pipeline_mode<synchronous>, transform_indices = @transform_4, window_bounds = array<i64: 1, 24>}, {transform_indices = @transform_5, window_bounds = array<i64: 32, 24>}]} {
    %c0 = arith.constant 0 : index
    %c0_0 = arith.constant 0 : index
    %0 = vector.load %arg1[%c0, %c0_0] : memref<32x48xf32, #tpu.memory_space<vmem>>, vector<32x48xf32>
    %1 = arith.truncf %0 : vector<32x48xf32> to vector<32x48xbf16>
    %c0_1 = arith.constant 0 : index
    %c0_2 = arith.constant 0 : index
    %2 = vector.load %arg2[%c0_1, %c0_2] : memref<48x128xbf16, #tpu.memory_space<vmem>>, vector<48x128xbf16>
    %cst = arith.constant dense<0.000000e+00> : vector<32x128xf32>
    %3 = tpu.matmul %1, %2, %cst {dimension_numbers = #tpu.dot_dimension_numbers<[1], [0], [0], [1], [0, 0, 1, 1], [], []>} : vector<32x48xbf16>, vector<48x128xbf16>, vector<32x128xf32> -> vector<32x128xf32>
    %c0_3 = arith.constant 0 : index
    %c0_4 = arith.constant 0 : index
    %4 = vector.load %arg3[%c0_3, %c0_4] : memref<1x128xf32, #tpu.memory_space<vmem>>, vector<1x128xf32>
    %5 = vector.broadcast %4 : vector<1x128xf32> to vector<32x128xf32>
    %6 = arith.addf %3, %5 : vector<32x128xf32>
    %cst_5 = arith.constant 0.000000e+00 : f32
    %7 = vector.broadcast %cst_5 : f32 to vector<32x128xf32>
    %8 = arith.maximumf %6, %7 : vector<32x128xf32>
    %9 = arith.truncf %8 : vector<32x128xf32> to vector<32x128xbf16>
    %c0_6 = arith.constant 0 : index
    %c0_7 = arith.constant 0 : index
    %10 = vector.load %arg4[%c0_6, %c0_7] : memref<128x24xbf16, #tpu.memory_space<vmem>>, vector<128x24xbf16>
    %cst_8 = arith.constant dense<0.000000e+00> : vector<32x24xf32>
    %11 = tpu.matmul %9, %10, %cst_8 {dimension_numbers = #tpu.dot_dimension_numbers<[1], [0], [0], [1], [0, 0, 1, 1], [], []>} : vector<32x128xbf16>, vector<128x24xbf16>, vector<32x24xf32> -> vector<32x24xf32>
    %c0_9 = arith.constant 0 : index
    %c0_10 = arith.constant 0 : index
    %12 = vector.load %arg5[%c0_9, %c0_10] : memref<1x24xf32, #tpu.memory_space<vmem>>, vector<1x24xf32>
    %13 = vector.broadcast %12 : vector<1x24xf32> to vector<32x24xf32>
    %14 = arith.addf %11, %13 : vector<32x24xf32>
    %c0_11 = arith.constant 0 : index
    %c0_12 = arith.constant 0 : index
    %15 = vector.load %arg6[%c0_11, %c0_12] : memref<32x24xf32, #tpu.memory_space<vmem>>, vector<32x24xf32>
    tpu.vector_store %arg6[%c0_11, %c0_12], %14 {strides = array<i32>} : memref<32x24xf32, #tpu.memory_space<vmem>>, vector<32x24xf32>,
    return
  }
  func.func @transform_0(%arg0: i32) -> (i32, i32) {
    %c0_i32 = arith.constant 0 : i32
    %c0_i32_0 = arith.constant 0 : i32
    return %arg0, %c0_i32 : i32, i32
  }
  func.func @transform_1(%arg0: i32) -> (i32, i32) {
    %c0_i32 = arith.constant 0 : i32
    %c0_i32_0 = arith.constant 0 : i32
    %c0_i32_1 = arith.constant 0 : i32
    return %c0_i32, %c0_i32_0 : i32, i32
  }
  func.func @transform_2(%arg0: i32) -> (i32, i32) {
    %c0_i32 = arith.constant 0 : i32
    %c0_i32_0 = arith.constant 0 : i32
    %c0_i32_1 = arith.constant 0 : i32
    return %c0_i32, %c0_i32_0 : i32, i32
  }
  func.func @transform_3(%arg0: i32) -> (i32, i32) {
    %c0_i32 = arith.constant 0 : i32
    %c0_i32_0 = arith.constant 0 : i32
    %c0_i32_1 = arith.constant 0 : i32
    return %c0_i32, %c0_i32_0 : i32, i32
  }
  func.func @transform_4(%arg0: i32) -> (i32, i32) {
    %c0_i32 = arith.constant 0 : i32
    %c0_i32_0 = arith.constant 0 : i32
    %c0_i32_1 = arith.constant 0 : i32
    return %c0_i32, %c0_i32_0 : i32, i32
  }
  func.func @transform_5(%arg0: i32) -> (i32, i32) {
    %c0_i32 = arith.constant 0 : i32
    %c0_i32_0 = arith.constant 0 : i32
    return %arg0, %c0_i32 : i32, i32
  }
}

module attributes {stable_mosaic.version = 11 : i64} {
  func.func @_mlp_kernel(%arg0: i32, %arg1: memref<32x48xf32, #tpu.memory_space<vmem>>, %arg2: memref<48x128xbf16, #tpu.memory_space<vmem>>, %arg3: memref<1x128xf32, #tpu.memory_space<vmem>>, %arg4: memref<128x24xbf16, #tpu.memory_space<vmem>>, %arg5: memref<1x24xf32, #tpu.memory_space<vmem>>, %arg6: memref<32x24xf32, #tpu.memory_space<vmem>>) attributes {dimension_semantics = [#tpu.dimension_semantics<parallel>], iteration_bounds = array<i64: 2>, scalar_prefetch = 0 : i64, scratch_operands = 0 : i64, tpu.core_type = #tpu.core_type<tc>, window_params = [{transform_indices = @transform_0, window_bounds = array<i64: 32, 48>}, {pipeline_mode = #tpu.pipeline_mode<synchronous>, transform_indices = @transform_1, window_bounds = array<i64: 48, 128>}, {pipeline_mode = #tpu.pipeline_mode<synchronous>, transform_indices = @transform_2, window_bounds = array<i64: 1, 128>}, {pipeline_mode = #tpu.pipeline_mode<synchronous>, transform_indices = @transform_3, window_bounds = array<i64: 128, 24>}, {pipeline_mode = #tpu.pipeline_mode<synchronous>, transform_indices = @transform_4, window_bounds = array<i64: 1, 24>}, {transform_indices = @transform_5, window_bounds = array<i64: 32, 24>}]} {
    %c0 = arith.constant 0 : index
    %c0_0 = arith.constant 0 : index
    %0 = vector.load %arg1[%c0, %c0_0] : memref<32x48xf32, #tpu.memory_space<vmem>>, vector<32x48xf32>
    %1 = arith.truncf %0 : vector<32x48xf32> to vector<32x48xbf16>
    %c0_1 = arith.constant 0 : index
    %c0_2 = arith.constant 0 : index
    %2 = vector.load %arg2[%c0_1, %c0_2] : memref<48x128xbf16, #tpu.memory_space<vmem>>, vector<48x128xbf16>
    %cst = arith.constant dense<0.000000e+00> : vector<32x128xf32>
    %3 = tpu.matmul %1, %2, %cst {dimension_numbers = #tpu.dot_dimension_numbers<[1], [0], [0], [1], [0, 0, 1, 1], [], []>} : vector<32x48xbf16>, vector<48x128xbf16>, vector<32x128xf32> -> vector<32x128xf32>
    %c0_3 = arith.constant 0 : index
    %c0_4 = arith.constant 0 : index
    %4 = vector.load %arg3[%c0_3, %c0_4] : memref<1x128xf32, #tpu.memory_space<vmem>>, vector<1x128xf32>
    %5 = vector.broadcast %4 : vector<1x128xf32> to vector<32x128xf32>
    %6 = arith.addf %3, %5 : vector<32x128xf32>
    %cst_5 = arith.constant 0.000000e+00 : f32
    %7 = vector.broadcast %cst_5 : f32 to vector<32x128xf32>
    %8 = arith.maximumf %6, %7 : vector<32x128xf32>
    %9 = arith.truncf %8 : vector<32x128xf32> to vector<32x128xbf16>
    %c0_6 = arith.constant 0 : index
    %c0_7 = arith.constant 0 : index
    %10 = vector.load %arg4[%c0_6, %c0_7] : memref<128x24xbf16, #tpu.memory_space<vmem>>, vector<128x24xbf16>
    %cst_8 = arith.constant dense<0.000000e+00> : vector<32x24xf32>
    %11 = tpu.matmul %9, %10, %cst_8 {dimension_numbers = #tpu.dot_dimension_numbers<[1], [0], [0], [1], [0, 0, 1, 1], [], []>} : vector<32x128xbf16>, vector<128x24xbf16>, vector<32x24xf32> -> vector<32x24xf32>
    %c0_9 = arith.constant 0 : index
    %c0_10 = arith.constant 0 : index
    %12 = vector.load %arg5[%c0_9, %c0_10] : memref<1x24xf32, #tpu.memory_space<vmem>>, vector<1x24xf32>
    %13 = vector.broadcast %12 : vector<1x24xf32> to vector<32x24xf32>
    %14 = arith.addf %11, %13 : vector<32x24xf32>
    %c0_11 = arith.constant 0 : index
    %c0_12 = arith.constant 0 : index
    %15 = vector.load %arg6[%c0_11, %c0_12] : memref<32x24xf32, #tpu.memory_space<vmem>>, vector<32x24xf32>
    tpu.vector_store %arg6[%c0_11, %c0_12], %14 {strides = array<i32>} : memref<32x24xf32, #tpu.memory_space<vmem>>, vector<32x24xf32>,
    return
  }
  func.func @transform_0(%arg0: i32) -> (i32, i32) {
    %c0_i32 = arith.constant 0 : i32
    %c0_i32_0 = arith.constant 0 : i32
    return %arg0, %c0_i32 : i32, i32
  }
  func.func @transform_1(%arg0: i32) -> (i32, i32) {
    %c0_i32 = arith.constant 0 : i32
    %c0_i32_0 = arith.constant 0 : i32
    %c0_i32_1 = arith.constant 0 : i32
    return %c0_i32, %c0_i32_0 : i32, i32
  }
  func.func @transform_2(%arg0: i32) -> (i32, i32) {
    %c0_i32 = arith.constant 0 : i32
    %c0_i32_0 = arith.constant 0 : i32
    %c0_i32_1 = arith.constant 0 : i32
    return %c0_i32, %c0_i32_0 : i32, i32
  }
  func.func @transform_3(%arg0: i32) -> (i32, i32) {
    %c0_i32 = arith.constant 0 : i32
    %c0_i32_0 = arith.constant 0 : i32
    %c0_i32_1 = arith.constant 0 : i32
    return %c0_i32, %c0_i32_0 : i32, i32
  }
  func.func @transform_4(%arg0: i32) -> (i32, i32) {
    %c0_i32 = arith.constant 0 : i32
    %c0_i32_0 = arith.constant 0 : i32
    %c0_i32_1 = arith.constant 0 : i32
    return %c0_i32, %c0_i32_0 : i32, i32
  }
  func.func @transform_5(%arg0: i32) -> (i32, i32) {
    %c0_i32 = arith.constant 0 : i32
    %c0_i32_0 = arith.constant 0 : i32
    return %arg0, %c0_i32 : i32, i32
  }
}

</mosaic_0001>

<bundles_post_ra>
// kernel: tpu_custom_call.1
= control target key start
LH: loop header
LB: loop body
LE: loop exit
PB: predicated region body
PF: predicated region fallthrough
CT: control target
= control target key end

     0   :  { %s1002_s18 = smov 0   ;;  %s1004_s19 = smov 0   ;;  %s1141_s0 = inlined_call_operand.vmem [shape: f32[48,48], index: 0, kind: input, shape index: {}]   ;;  %s1142_s1 = inlined_call_operand.vmem [shape: bf16[48,128], index: 1, kind: input, shape index: {}]   ;;  %s1143_s2 = inlined_call_operand.vmem [shape: f32[1,128], index: 2, kind: input, shape index: {}]   ;;  %s1144_s3 = inlined_call_operand.vmem [shape: bf16[128,24], index: 3, kind: input, shape index: {}]   ;;  %s1145_s4 = inlined_call_operand.vmem [shape: f32[1,24], index: 4, kind: input, shape index: {}]   ;;  %s1146_s5 = inlined_call_operand.vmem [shape: f32[48,24], index: 5, kind: output, shape index: {}]  }
   0x1   :  { %s1006_s20 = smov 0  }
   0x2 LB: > { %s1015_s21 = sadd.s32 4294967295, %s938_s20   ;;  %s1017_s22 = sadd.s32 1, %s938_s20   ;;  %s938_s20 = sphi %s1006_s20, %s1153_s20   ;;  %s934_s19 = sphi %s1004_s19, %s1152_s19   ;;  %s930_s18 = sphi %s1002_s18, %s1151_s18  }
   0x3   : > { %s129_s23 = ssub.s32 %s938_s20, %s1017_s22  ;;  %s132_s24 = sadd.s32 1, %s934_s19 }
   0x4   : > { %p130_p0 = scmp.eq.s32.totalorder %s129_s23, 0  ;;  %p142_p1 = scmp.ne.s32.totalorder %s934_s19, %s930_s18 }
   0x5   : > { %p143_p2 = scmp.eq.s32.totalorder %s1015_s21, 1  ;;  %p701_p3 = scmp.ge.s32.totalorder %s938_s20, 1 }
   0x6   : > { %s1025_s25 = scalar_select %p130_p0, %s934_s19, %s132_s24  }
   0x7   : > { %p1027_p4 = por %p143_p2, %p142_p1  ;;  %p196_p5 = scmp.lt.s32.totalorder %s938_s20, 3 }
   0x9   : > { %p197_p6 = pnand %p701_p3, %p196_p5 }
   0xa   : > { %v873_v0 = vld [vmem:[%s1142_s1] sm:$0xff] (!%p197_p6)   ;;  %s1035_s29 = sshll.u32 (!%p197_p6), %s1015_s21, 2  ;;  %v874_v1 = vld [vmem:[%s1142_s1 + $0x8] sm:$0xff] (!%p197_p6)   ;;  %v875_v2 = vld [vmem:[%s1142_s1 + $0x10] sm:$0xff] (!%p197_p6)   ;;  %vm284_vm0 = vcmask (!%p197_p6), 392192   ;;  %vm466_vm1 = vcmask (!%p197_p6), 195584  }
   0xb   : > { %200 = sbr.rel (%p197_p6) target bundleno = 515 (0x203), region = 40  ;;  %p232_p7 = scmp.lt.s32.totalorder (!%p197_p6), %s1035_s29, 5  ;;  %755 = vmatprep.subr.bf16.mxu0 (!%p197_p6), %v873_v0  ;;  %v876_v3 = vld [vmem:[%s1144_s3] sm:$0xff] (!%p197_p6)   ;;  %v877_v4 = vld [vmem:[%s1144_s3 + $0x8] sm:$0xff] (!%p197_p6)   ;;  %v878_v5 = vld [vmem:[%s1144_s3 + $0x10] sm:$0xff] (!%p197_p6)  }
   0xc   : > { %756 = vmatpush3.bf16.msra.mxu0 (!%p197_p6), %v873_v0  ;;  %765 = vmatprep.subr.bf16.mxu1 (!%p197_p6), %v876_v3  ;;  %v879_v12 = vld [vmem:[%s1144_s3 + $0x18] sm:$0xff] (!%p197_p6)   ;;  %v880_v13 = vld [vmem:[%s1144_s3 + $0x20] sm:$0xff] (!%p197_p6)   ;;  %v881_v14 = vld [vmem:[%s1144_s3 + $0x28] sm:$0xff] (!%p197_p6)  }
   0xd   : > { %757 = vmatprep.subr.bf16.mxu0 (!%p197_p6), %v874_v1  ;;  %766 = vmatpush3.bf16.msra.mxu1 (!%p197_p6), %v876_v3  ;;  %v882_v15 = vld [vmem:[%s1144_s3 + $0x30] sm:$0xff] (!%p197_p6)   ;;  %v883_v16 = vld [vmem:[%s1144_s3 + $0x38] sm:$0xff] (!%p197_p6)   ;;  %v705_v17 = vld [vmem:[%s1143_s2] ss:$0 sm:$0xff] (!%p197_p6) }
   0xe   : > { %767 = vmatprep.subr.bf16.mxu1 (!%p197_p6), %v877_v4  ;;  %v711_v32 = vld [vmem:[%s1145_s4] ss:$0 sm:$0xff] (!%p197_p6) }
  0x10   : > { %758 = vmatpush3.bf16.msra.mxu0 (!%p197_p6), %v874_v1 }
  0x11   : > { %759 = vmatprep.subr.bf16.mxu0 (!%p197_p6), %v875_v2  ;;  %768 = vmatpush3.bf16.msra.mxu1 (!%p197_p6), %v877_v4 }
  0x12   : > { %s233_s9 = scalar_select %p232_p7, %s1035_s29, 5  ;;  %769 = vmatprep.subr.bf16.mxu1 %v878_v5 }
  0x13   : > { %s737_s23 = sshll.u32 (%p1027_p4), %s1015_s21, 5 }
  0x14   : > { %s704_s14 = sshll.u32 %s233_s9, 3  ;;  %760 = vmatpush3.bf16.msra.mxu0 %v875_v2  ;;  %s1092_s28 = scalar_lea.vmem (%p1027_p4), %s1146_s5, %s737_s23  }
  0x15   : > { %s235_s17 = scalar_lea.vmem %s1141_s0, %s704_s14  ;;  %770 = vmatpush3.bf16.msra.mxu1 %v878_v5  ;;  %s224_s14 = sand.u32 1, %s930_s18  }
  0x16   : > { %v247_v6 = vld [vmem:[%s235_s17] sm:$0xff]  ;;  %v248_v7 = vld [vmem:[%s235_s17 + $0x8] sm:$0xff]  ;;  %v249_v8 = vld [vmem:[%s235_s17 + $0x10] sm:$0xff]  ;;  %771 = vmatprep.subr.bf16.mxu1 %v879_v12  ;;  %s702_s15 = sshll.u32 %s224_s14, 5  ;;  %s479_s18 = ssub.s32 (%p1027_p4), 6, %s1035_s29 }
  0x17   : > { %v251_v9 = vpack.c.bf16 %v248_v7, %v247_v6  ;;  %v250_v10 = vld [vmem:[%s235_s17 + $0x18] sm:$0xff]  ;;  %s1079_s20 = scalar_lea.vmem [#allocation2], %s702_s15   ;;  %p480_p8 = scmp.lt.s32.totalorder (%p1027_p4), %s479_s18, 4 }
  0x18   : > { %v252_v11 = vpack.c.bf16 %v250_v10, %v249_v8 }
  0x19   : > { %761 = vmatprep.mubr.msk.bf16.mxu0 %vm284_vm0, %v251_v9  ;;  %772 = vmatpush3.bf16.msra.mxu1 %v879_v12 }
  0x1a   : > { %762 = vmatmul.mubr.msk.bf16.vlgmr.msra.gmra.mrb[0].mxu0 %vm284_vm0, %v252_v11  ;;  %773 = vmatprep.subr.bf16.mxu1 %v880_v13 }
  0x1d   : > { %774 = vmatpush3.bf16.msra.mxu1 %v880_v13 }
  0x1e   : > { %775 = vmatprep.subr.bf16.mxu1 %v881_v14 }
  0x21   : > { %776 = vmatpush3.bf16.msra.mxu1 %v881_v14 }
  0x22   : > { %777 = vmatprep.subr.bf16.mxu1 %v882_v15 }
  0x25   : > { %778 = vmatpush3.bf16.msra.mxu1 %v882_v15 }
  0x26   : > { %779 = vmatprep.subr.bf16.mxu1 %v883_v16 }
  0x29   : > { %780 = vmatpush3.bf16.msra.mxu1 %v883_v16 }
  0xed   : > { %v763_v18 = vpop.f32.mrb[0].mxu0 }
  0xee   : > { %v334_v19 = vadd.f32 %v763_v18, %v705_v17  ;;  %v325_v20 = vpop.f32.mrb[1].mxu0 }
  0xef   : > { %v326_v21 = vadd.f32 %v705_v17, %v325_v20  ;;  %v764_v22 = vpop.f32.mrb[2].mxu0 }
  0xf0   : > { %v337_v23 = vadd.f32 %v764_v22, %v705_v17  ;;  %v328_v24 = vpop.f32.mrb[3].mxu0  ;;  %v342_v26 = vmax.f32 %v334_v19, 0.0 }
  0xf1   : > { %v329_v25 = vadd.f32 %v705_v17, %v328_v24  ;;  %v340_v28 = vmax.f32 %v326_v21, 0.0 }
  0xf2   : > { %v343_v27 = vmax.f32 %v337_v23, 0.0 }
  0xf3   : > { %v341_v29 = vmax.f32 %v329_v25, 0.0 }
  0xf4   : > { %v345_v30 = vpack.c.bf16 %v343_v27, %v342_v26 }
  0xf5   : > { %v344_v31 = vpack.c.bf16 %v341_v29, %v340_v28 }
  0xf7   : > { %781 = vmatprep.mubr.bf16.mxu1 %v344_v31 }
  0xf8   : > { %782 = vmatmul.mubr.bf16.vlgmr.msra.gmra.mrb[0].mxu1 %v345_v30 }
 0x1cb   : > { %v783_v33 = vpop.f32.mrb[0].mxu1  ;;  %477 = sbr.rel (!%p1027_p4) target bundleno = 515 (0x203), region = 44 }
 0x1cc   : > { %v460_v34 = vadd.f32 %v783_v33, %v711_v32  ;;  %v451_v35 = vpop.f32.mrb[1].mxu1 }
 0x1cd   : > { %v452_v36 = vadd.f32 %v711_v32, %v451_v35  ;;  %v784_v37 = vpop.f32.mrb[2].mxu1 }
 0x1ce   : > { %469 = vst.msk [vmem:[%s1079_s20 + $0x10] sm:$0xff] %vm466_vm1, %v460_v34  ;;  %v463_v38 = vadd.f32 %v784_v37, %v711_v32  ;;  %v454_v39 = vpop.f32.mrb[3].mxu1 }
 0x1cf   : > { %467 = vst.msk [vmem:[%s1079_s20] sm:$0xff] %vm466_vm1, %v452_v36  ;;  %v455_v40 = vadd.f32 %v711_v32, %v454_v39 }
 0x1d0   : > { %470 = vst.msk [vmem:[%s1079_s20 + $0x18] sm:$0xff] %vm466_vm1, %v463_v38 }
 0x1d1   : > { %468 = vst.msk [vmem:[%s1079_s20 + $0x8] sm:$0xff] %vm466_vm1, %v455_v40 }
 0x1d2   : > { %s1155_s18 = smov (!%p480_p8, %s479_s18), 4 }
 0x1d3   : > { %s722_s30 = sshll.u32 %s1155_s18, 7 }
 0x1d4   : > { %p725_p9 = scmp.eq.s32.totalorder %s722_s30, 0 }
 0x1d5   : > { %s1098_s6 = sshrl.u32 (!%p725_p9), %s1155_s18, 2 }
 0x1d6   : > { %488 = sbr.rel (%p725_p9) target bundleno = 515 (0x203), region = 48  ;;  %p726_p10 = scmp.le.s32.totalorder (!%p725_p9), %s1098_s6, 0 }
 0x1dd   : > { %654 = sbr.rel (%p726_p10) target bundleno = 494 (0x1ee), region = 124  ;;  %s1148_s21 = smov (!%p726_p10), %s1092_s28 }
 0x1de   : > { %s1149_s26 = smov (!%p726_p10), %s1079_s20  ;;  %s1107_s29 = smov (!%p726_p10), 0  }
 0x1df   : > { %s952_s7 = smov (!%p726_p10), 0  }
 0x1e4 LB: >> { %v556_v41 = vld [vmem:[%s946_s26] sm:$0xff]  ;;  %v558_v42 = vld [vmem:[%s946_s26 + $0x8] sm:$0xff]  ;;  %v560_v43 = vld [vmem:[%s946_s26 + $0x10] sm:$0xff]  ;;  %s564_s8 = sadd.s32 1, %s950_s29  ;;  %s550_s7 = sadd.s32 1, %s954_s7   ;;  %s954_s7 = sphi %s952_s7, %s550_s7   ;;  %s950_s29 = sphi %s1107_s29, %s1150_s29   ;;  %s946_s26 = sphi %s1149_s26, %s569_s26   ;;  %s942_s21 = sphi %s1148_s21, %s570_s21  }
 0x1e5   : >> { %557 = vst [vmem:[%s942_s21] sm:$0xff] %v556_v41  ;;  %559 = vst [vmem:[%s942_s21 + $0x8] sm:$0xff] %v558_v42  ;;  %v562_v44 = vld [vmem:[%s946_s26 + $0x18] sm:$0xff]  ;;  %p565_p11 = scmp.ge.s32.totalorder %s564_s8, %s1098_s6  ;;  %p549_p12 = scmp.ge.s32.totalorder %s550_s7, %s1098_s6 }
 0x1e6   : >> { %561 = vst [vmem:[%s942_s21 + $0x10] sm:$0xff] %v560_v43  ;;  %563 = vst [vmem:[%s942_s21 + $0x18] sm:$0xff] %v562_v44 }
 0x1e7   : >> { %s1157_s8 = smov (%p565_p11, %s564_s8), 0  ;;  %552 = sbr.rel (!%p549_p12) target bundleno = 484 (0x1e4), region = 130 }
 0x1e8   : >> { %s727_s9 = sshll.u32 %s1157_s8, 5  ;;  %s1150_s29 = smov %s1157_s8 }
 0x1e9   : >> { %s569_s26 = scalar_lea.vmem %s1079_s20, %s727_s9 [#allocation2]   ;;  %s570_s21 = scalar_lea.vmem %s1092_s28, %s727_s9  }
 0x1ee PF: > { %s1123_s10 = sand.u32 3, %s1155_s18   ;;  %s738_s11 = sshll.u32 %s1098_s6, 5 }
 0x1ef   : > { %s575_s12 = scalar_lea.vmem %s1079_s20, %s738_s11 [#allocation2]   ;;  %s577_s13 = scalar_lea.vmem %s1092_s28, %s738_s11  }
 0x1f0   : > { %p732_p13 = scmp.le.s32.totalorder %s1123_s10, 0 }
 0x1f1   : > { %s956_s14 = smov (!%p732_p13), %s577_s13   ;;  %s960_s15 = smov (!%p732_p13), %s575_s12  }
 0x1f2   : > { %668 = sbr.rel (%p732_p13) target bundleno = 515 (0x203), region = 135  ;;  %s964_s16 = smov (!%p732_p13), 0  }
 0x1f3   : > { %s968_s17 = smov (!%p732_p13), 0  }
 0x1f9 LB: >> { %v587_v45 = vld [vmem:[%s962_s15] sm:$0xff]  ;;  %s589_s18 = sadd.s32 1, %s966_s16  ;;  %s581_s17 = sadd.s32 1, %s970_s17   ;;  %s970_s17 = sphi %s968_s17, %s581_s17   ;;  %s966_s16 = sphi %s964_s16, %s965_s16   ;;  %s962_s15 = sphi %s960_s15, %s594_s15   ;;  %s958_s14 = sphi %s956_s14, %s595_s14  }
 0x1fa   : >> { %588 = vst [vmem:[%s958_s14] sm:$0xff] %v587_v45  ;;  %p590_p0 = scmp.ge.s32.totalorder %s589_s18, %s1123_s10  ;;  %p580_p1 = scmp.ge.s32.totalorder %s581_s17, %s1123_s10 }
 0x1fc   : >> { %s1159_s18 = smov (%p590_p0, %s589_s18), 0  ;;  %583 = sbr.rel (!%p580_p1) target bundleno = 505 (0x1f9), region = 141 }
 0x1fd   : >> { %s733_s20 = sshll.u32 %s1159_s18, 3  ;;  %s965_s16 = smov %s1159_s18  }
 0x1fe   : >> { %s594_s15 = scalar_lea.vmem %s575_s12, %s733_s20 [#allocation2]   ;;  %s595_s14 = scalar_lea.vmem %s577_s13, %s733_s20  }
 0x203 PF: > { %p12_p2 = scmp.ge.s32.totalorder %s1017_s22, 4   ;;  %s1151_s18 = smov %s934_s19 }
 0x204   : > { %s1152_s19 = smov %s1025_s25  ;;  %s1153_s20 = smov %s1017_s22 }
 0x205   :  { %14 = sbr.rel (!%p12_p2) target bundleno = 2 (0x2), region = 152 }

// kernel: tpu_custom_call.1
= control target key start
LH: loop header
LB: loop body
LE: loop exit
PB: predicated region body
PF: predicated region fallthrough
CT: control target
= control target key end

     0   :  { %s1002_s18 = smov 0   ;;  %s1004_s19 = smov 0   ;;  %s1141_s0 = inlined_call_operand.vmem [shape: f32[48,48], index: 0, kind: input, shape index: {}]   ;;  %s1142_s1 = inlined_call_operand.vmem [shape: bf16[48,128], index: 1, kind: input, shape index: {}]   ;;  %s1143_s2 = inlined_call_operand.vmem [shape: f32[1,128], index: 2, kind: input, shape index: {}]   ;;  %s1144_s3 = inlined_call_operand.vmem [shape: bf16[128,24], index: 3, kind: input, shape index: {}]   ;;  %s1145_s4 = inlined_call_operand.vmem [shape: f32[1,24], index: 4, kind: input, shape index: {}]   ;;  %s1146_s5 = inlined_call_operand.vmem [shape: f32[48,24], index: 5, kind: output, shape index: {}]  }
   0x1   :  { %s1006_s20 = smov 0  }
   0x2 LB: > { %s1015_s21 = sadd.s32 4294967295, %s938_s20   ;;  %s1017_s22 = sadd.s32 1, %s938_s20   ;;  %s938_s20 = sphi %s1006_s20, %s1153_s20   ;;  %s934_s19 = sphi %s1004_s19, %s1152_s19   ;;  %s930_s18 = sphi %s1002_s18, %s1151_s18  }
   0x3   : > { %s129_s23 = ssub.s32 %s938_s20, %s1017_s22  ;;  %s132_s24 = sadd.s32 1, %s934_s19 }
   0x4   : > { %p130_p0 = scmp.eq.s32.totalorder %s129_s23, 0  ;;  %p142_p1 = scmp.ne.s32.totalorder %s934_s19, %s930_s18 }
   0x5   : > { %p143_p2 = scmp.eq.s32.totalorder %s1015_s21, 1  ;;  %p701_p3 = scmp.ge.s32.totalorder %s938_s20, 1 }
   0x6   : > { %s1025_s25 = scalar_select %p130_p0, %s934_s19, %s132_s24  }
   0x7   : > { %p1027_p4 = por %p143_p2, %p142_p1  ;;  %p196_p5 = scmp.lt.s32.totalorder %s938_s20, 3 }
   0x9   : > { %p197_p6 = pnand %p701_p3, %p196_p5 }
   0xa   : > { %v873_v0 = vld [vmem:[%s1142_s1] sm:$0xff] (!%p197_p6)   ;;  %s1035_s29 = sshll.u32 (!%p197_p6), %s1015_s21, 2  ;;  %v874_v1 = vld [vmem:[%s1142_s1 + $0x8] sm:$0xff] (!%p197_p6)   ;;  %v875_v2 = vld [vmem:[%s1142_s1 + $0x10] sm:$0xff] (!%p197_p6)   ;;  %vm284_vm0 = vcmask (!%p197_p6), 392192   ;;  %vm466_vm1 = vcmask (!%p197_p6), 195584  }
   0xb   : > { %200 = sbr.rel (%p197_p6) target bundleno = 515 (0x203), region = 40  ;;  %p232_p7 = scmp.lt.s32.totalorder (!%p197_p6), %s1035_s29, 5  ;;  %755 = vmatprep.subr.bf16.mxu0 (!%p197_p6), %v873_v0  ;;  %v876_v3 = vld [vmem:[%s1144_s3] sm:$0xff] (!%p197_p6)   ;;  %v877_v4 = vld [vmem:[%s1144_s3 + $0x8] sm:$0xff] (!%p197_p6)   ;;  %v878_v5 = vld [vmem:[%s1144_s3 + $0x10] sm:$0xff] (!%p197_p6)  }
   0xc   : > { %756 = vmatpush3.bf16.msra.mxu0 (!%p197_p6), %v873_v0  ;;  %765 = vmatprep.subr.bf16.mxu1 (!%p197_p6), %v876_v3  ;;  %v879_v12 = vld [vmem:[%s1144_s3 + $0x18] sm:$0xff] (!%p197_p6)   ;;  %v880_v13 = vld [vmem:[%s1144_s3 + $0x20] sm:$0xff] (!%p197_p6)   ;;  %v881_v14 = vld [vmem:[%s1144_s3 + $0x28] sm:$0xff] (!%p197_p6)  }
   0xd   : > { %757 = vmatprep.subr.bf16.mxu0 (!%p197_p6), %v874_v1  ;;  %766 = vmatpush3.bf16.msra.mxu1 (!%p197_p6), %v876_v3  ;;  %v882_v15 = vld [vmem:[%s1144_s3 + $0x30] sm:$0xff] (!%p197_p6)   ;;  %v883_v16 = vld [vmem:[%s1144_s3 + $0x38] sm:$0xff] (!%p197_p6)   ;;  %v705_v17 = vld [vmem:[%s1143_s2] ss:$0 sm:$0xff] (!%p197_p6) }
   0xe   : > { %767 = vmatprep.subr.bf16.mxu1 (!%p197_p6), %v877_v4  ;;  %v711_v32 = vld [vmem:[%s1145_s4] ss:$0 sm:$0xff] (!%p197_p6) }
  0x10   : > { %758 = vmatpush3.bf16.msra.mxu0 (!%p197_p6), %v874_v1 }
  0x11   : > { %759 = vmatprep.subr.bf16.mxu0 (!%p197_p6), %v875_v2  ;;  %768 = vmatpush3.bf16.msra.mxu1 (!%p197_p6), %v877_v4 }
  0x12   : > { %s233_s9 = scalar_select %p232_p7, %s1035_s29, 5  ;;  %769 = vmatprep.subr.bf16.mxu1 %v878_v5 }
  0x13   : > { %s737_s23 = sshll.u32 (%p1027_p4), %s1015_s21, 5 }
  0x14   : > { %s704_s14 = sshll.u32 %s233_s9, 3  ;;  %760 = vmatpush3.bf16.msra.mxu0 %v875_v2  ;;  %s1092_s28 = scalar_lea.vmem (%p1027_p4), %s1146_s5, %s737_s23  }
  0x15   : > { %s235_s17 = scalar_lea.vmem %s1141_s0, %s704_s14  ;;  %770 = vmatpush3.bf16.msra.mxu1 %v878_v5  ;;  %s224_s14 = sand.u32 1, %s930_s18  }
  0x16   : > { %v247_v6 = vld [vmem:[%s235_s17] sm:$0xff]  ;;  %v248_v7 = vld [vmem:[%s235_s17 + $0x8] sm:$0xff]  ;;  %v249_v8 = vld [vmem:[%s235_s17 + $0x10] sm:$0xff]  ;;  %771 = vmatprep.subr.bf16.mxu1 %v879_v12  ;;  %s702_s15 = sshll.u32 %s224_s14, 5  ;;  %s479_s18 = ssub.s32 (%p1027_p4), 6, %s1035_s29 }
  0x17   : > { %v251_v9 = vpack.c.bf16 %v248_v7, %v247_v6  ;;  %v250_v10 = vld [vmem:[%s235_s17 + $0x18] sm:$0xff]  ;;  %s1079_s20 = scalar_lea.vmem [#allocation2], %s702_s15   ;;  %p480_p8 = scmp.lt.s32.totalorder (%p1027_p4), %s479_s18, 4 }
  0x18   : > { %v252_v11 = vpack.c.bf16 %v250_v10, %v249_v8 }
  0x19   : > { %761 = vmatprep.mubr.msk.bf16.mxu0 %vm284_vm0, %v251_v9  ;;  %772 = vmatpush3.bf16.msra.mxu1 %v879_v12 }
  0x1a   : > { %762 = vmatmul.mubr.msk.bf16.vlgmr.msra.gmra.mrb[0].mxu0 %vm284_vm0, %v252_v11  ;;  %773 = vmatprep.subr.bf16.mxu1 %v880_v13 }
  0x1d   : > { %774 = vmatpush3.bf16.msra.mxu1 %v880_v13 }
  0x1e   : > { %775 = vmatprep.subr.bf16.mxu1 %v881_v14 }
  0x21   : > { %776 = vmatpush3.bf16.msra.mxu1 %v881_v14 }
  0x22   : > { %777 = vmatprep.subr.bf16.mxu1 %v882_v15 }
  0x25   : > { %778 = vmatpush3.bf16.msra.mxu1 %v882_v15 }
  0x26   : > { %779 = vmatprep.subr.bf16.mxu1 %v883_v16 }
  0x29   : > { %780 = vmatpush3.bf16.msra.mxu1 %v883_v16 }
  0xed   : > { %v763_v18 = vpop.f32.mrb[0].mxu0 }
  0xee   : > { %v334_v19 = vadd.f32 %v763_v18, %v705_v17  ;;  %v325_v20 = vpop.f32.mrb[1].mxu0 }
  0xef   : > { %v326_v21 = vadd.f32 %v705_v17, %v325_v20  ;;  %v764_v22 = vpop.f32.mrb[2].mxu0 }
  0xf0   : > { %v337_v23 = vadd.f32 %v764_v22, %v705_v17  ;;  %v328_v24 = vpop.f32.mrb[3].mxu0  ;;  %v342_v26 = vmax.f32 %v334_v19, 0.0 }
  0xf1   : > { %v329_v25 = vadd.f32 %v705_v17, %v328_v24  ;;  %v340_v28 = vmax.f32 %v326_v21, 0.0 }
  0xf2   : > { %v343_v27 = vmax.f32 %v337_v23, 0.0 }
  0xf3   : > { %v341_v29 = vmax.f32 %v329_v25, 0.0 }
  0xf4   : > { %v345_v30 = vpack.c.bf16 %v343_v27, %v342_v26 }
  0xf5   : > { %v344_v31 = vpack.c.bf16 %v341_v29, %v340_v28 }
  0xf7   : > { %781 = vmatprep.mubr.bf16.mxu1 %v344_v31 }
  0xf8   : > { %782 = vmatmul.mubr.bf16.vlgmr.msra.gmra.mrb[0].mxu1 %v345_v30 }
 0x1cb   : > { %v783_v33 = vpop.f32.mrb[0].mxu1  ;;  %477 = sbr.rel (!%p1027_p4) target bundleno = 515 (0x203), region = 44 }
 0x1cc   : > { %v460_v34 = vadd.f32 %v783_v33, %v711_v32  ;;  %v451_v35 = vpop.f32.mrb[1].mxu1 }
 0x1cd   : > { %v452_v36 = vadd.f32 %v711_v32, %v451_v35  ;;  %v784_v37 = vpop.f32.mrb[2].mxu1 }
 0x1ce   : > { %469 = vst.msk [vmem:[%s1079_s20 + $0x10] sm:$0xff] %vm466_vm1, %v460_v34  ;;  %v463_v38 = vadd.f32 %v784_v37, %v711_v32  ;;  %v454_v39 = vpop.f32.mrb[3].mxu1 }
 0x1cf   : > { %467 = vst.msk [vmem:[%s1079_s20] sm:$0xff] %vm466_vm1, %v452_v36  ;;  %v455_v40 = vadd.f32 %v711_v32, %v454_v39 }
 0x1d0   : > { %470 = vst.msk [vmem:[%s1079_s20 + $0x18] sm:$0xff] %vm466_vm1, %v463_v38 }
 0x1d1   : > { %468 = vst.msk [vmem:[%s1079_s20 + $0x8] sm:$0xff] %vm466_vm1, %v455_v40 }
 0x1d2   : > { %s1155_s18 = smov (!%p480_p8, %s479_s18), 4 }
 0x1d3   : > { %s722_s30 = sshll.u32 %s1155_s18, 7 }
 0x1d4   : > { %p725_p9 = scmp.eq.s32.totalorder %s722_s30, 0 }
 0x1d5   : > { %s1098_s6 = sshrl.u32 (!%p725_p9), %s1155_s18, 2 }
 0x1d6   : > { %488 = sbr.rel (%p725_p9) target bundleno = 515 (0x203), region = 48  ;;  %p726_p10 = scmp.le.s32.totalorder (!%p725_p9), %s1098_s6, 0 }
 0x1dd   : > { %654 = sbr.rel (%p726_p10) target bundleno = 494 (0x1ee), region = 124  ;;  %s1148_s21 = smov (!%p726_p10), %s1092_s28 }
 0x1de   : > { %s1149_s26 = smov (!%p726_p10), %s1079_s20  ;;  %s1107_s29 = smov (!%p726_p10), 0  }
 0x1df   : > { %s952_s7 = smov (!%p726_p10), 0  }
 0x1e4 LB: >> { %v556_v41 = vld [vmem:[%s946_s26] sm:$0xff]  ;;  %v558_v42 = vld [vmem:[%s946_s26 + $0x8] sm:$0xff]  ;;  %v560_v43 = vld [vmem:[%s946_s26 + $0x10] sm:$0xff]  ;;  %s564_s8 = sadd.s32 1, %s950_s29  ;;  %s550_s7 = sadd.s32 1, %s954_s7   ;;  %s954_s7 = sphi %s952_s7, %s550_s7   ;;  %s950_s29 = sphi %s1107_s29, %s1150_s29   ;;  %s946_s26 = sphi %s1149_s26, %s569_s26   ;;  %s942_s21 = sphi %s1148_s21, %s570_s21  }
 0x1e5   : >> { %557 = vst [vmem:[%s942_s21] sm:$0xff] %v556_v41  ;;  %559 = vst [vmem:[%s942_s21 + $0x8] sm:$0xff] %v558_v42  ;;  %v562_v44 = vld [vmem:[%s946_s26 + $0x18] sm:$0xff]  ;;  %p565_p11 = scmp.ge.s32.totalorder %s564_s8, %s1098_s6  ;;  %p549_p12 = scmp.ge.s32.totalorder %s550_s7, %s1098_s6 }
 0x1e6   : >> { %561 = vst [vmem:[%s942_s21 + $0x10] sm:$0xff] %v560_v43  ;;  %563 = vst [vmem:[%s942_s21 + $0x18] sm:$0xff] %v562_v44 }
 0x1e7   : >> { %s1157_s8 = smov (%p565_p11, %s564_s8), 0  ;;  %552 = sbr.rel (!%p549_p12) target bundleno = 484 (0x1e4), region = 130 }
 0x1e8   : >> { %s727_s9 = sshll.u32 %s1157_s8, 5  ;;  %s1150_s29 = smov %s1157_s8 }
 0x1e9   : >> { %s569_s26 = scalar_lea.vmem %s1079_s20, %s727_s9 [#allocation2]   ;;  %s570_s21 = scalar_lea.vmem %s1092_s28, %s727_s9  }
 0x1ee PF: > { %s1123_s10 = sand.u32 3, %s1155_s18   ;;  %s738_s11 = sshll.u32 %s1098_s6, 5 }
 0x1ef   : > { %s575_s12 = scalar_lea.vmem %s1079_s20, %s738_s11 [#allocation2]   ;;  %s577_s13 = scalar_lea.vmem %s1092_s28, %s738_s11  }
 0x1f0   : > { %p732_p13 = scmp.le.s32.totalorder %s1123_s10, 0 }
 0x1f1   : > { %s956_s14 = smov (!%p732_p13), %s577_s13   ;;  %s960_s15 = smov (!%p732_p13), %s575_s12  }
 0x1f2   : > { %668 = sbr.rel (%p732_p13) target bundleno = 515 (0x203), region = 135  ;;  %s964_s16 = smov (!%p732_p13), 0  }
 0x1f3   : > { %s968_s17 = smov (!%p732_p13), 0  }
 0x1f9 LB: >> { %v587_v45 = vld [vmem:[%s962_s15] sm:$0xff]  ;;  %s589_s18 = sadd.s32 1, %s966_s16  ;;  %s581_s17 = sadd.s32 1, %s970_s17   ;;  %s970_s17 = sphi %s968_s17, %s581_s17   ;;  %s966_s16 = sphi %s964_s16, %s965_s16   ;;  %s962_s15 = sphi %s960_s15, %s594_s15   ;;  %s958_s14 = sphi %s956_s14, %s595_s14  }
 0x1fa   : >> { %588 = vst [vmem:[%s958_s14] sm:$0xff] %v587_v45  ;;  %p590_p0 = scmp.ge.s32.totalorder %s589_s18, %s1123_s10  ;;  %p580_p1 = scmp.ge.s32.totalorder %s581_s17, %s1123_s10 }
 0x1fc   : >> { %s1159_s18 = smov (%p590_p0, %s589_s18), 0  ;;  %583 = sbr.rel (!%p580_p1) target bundleno = 505 (0x1f9), region = 141 }
 0x1fd   : >> { %s733_s20 = sshll.u32 %s1159_s18, 3  ;;  %s965_s16 = smov %s1159_s18  }
 0x1fe   : >> { %s594_s15 = scalar_lea.vmem %s575_s12, %s733_s20 [#allocation2]   ;;  %s595_s14 = scalar_lea.vmem %s577_s13, %s733_s20  }
 0x203 PF: > { %p12_p2 = scmp.ge.s32.totalorder %s1017_s22, 4   ;;  %s1151_s18 = smov %s934_s19 }
 0x204   : > { %s1152_s19 = smov %s1025_s25  ;;  %s1153_s20 = smov %s1017_s22 }
 0x205   :  { %14 = sbr.rel (!%p12_p2) target bundleno = 2 (0x2), region = 152 }

</bundles_post_ra>
